<compile_context>
chip_gen: v7x
topology: tpu7x:2x2x1
jax: 0.10.0
libtpu: 0.0.40
codegen_flags: <defaults>
</compile_context>

<pallas_src>
import functools

import jax
import jax.numpy as jnp
from jax.experimental import pallas as pl
from jax.experimental.pallas import tpu as pltpu


def _round_up(x, m):
    return ((x + m - 1) // m) * m


def _mlp_kernel(x_ref,
                w1_ref, b1_ref,
                w2_ref, b2_ref,
                w3_ref, b3_ref,
                w4_ref, b4_ref,
                o_ref):
    # fc1 + relu  (cast x to bf16 in-kernel; f32 accumulation on the MXU)
    x = x_ref[...].astype(jnp.bfloat16)
    h = jnp.dot(x, w1_ref[...], preferred_element_type=jnp.float32)
    h = jnp.maximum(h + b1_ref[...], 0.0)
    # fc2 + relu
    h = jnp.dot(h.astype(jnp.bfloat16), w2_ref[...],
                preferred_element_type=jnp.float32)
    h = jnp.maximum(h + b2_ref[...], 0.0)
    # fc3 + relu  (output padded 64 -> 128 lanes; padded cols are exactly 0)
    h = jnp.dot(h.astype(jnp.bfloat16), w3_ref[...],
                preferred_element_type=jnp.float32)
    h = jnp.maximum(h + b3_ref[...], 0.0)
    # fc4 (zero-padded rows of w4 contribute nothing) -> (TM, 10) logits
    logits = jnp.dot(h.astype(jnp.bfloat16), w4_ref[...],
                     preferred_element_type=jnp.float32)
    logits = logits + b4_ref[...]
    # log_softmax over dim=1 (numerically stable, f32)
    m = jnp.max(logits, axis=-1, keepdims=True)
    shifted = logits - m
    lse = jnp.log(jnp.sum(jnp.exp(shifted), axis=-1, keepdims=True))
    o_ref[...] = (shifted - lse).astype(o_ref.dtype)


def _pick_tile(B):
    """Batch tile: multiple of 8 rows, <=1024, and >=2 grid steps when B allows
    (so the 'parallel' batch axis can shard across both v7x TensorCores)."""
    if B < 16:
        return _round_up(B, 8)
    return min(1024, _round_up(pl.cdiv(B, 2), 8))


@jax.jit
def classifier_catdogs_forward(x_nchw, params):
    """x_nchw: (B, 1, 28, 28) float32.  Returns (B, 10) log-probabilities (f32)."""
    B = x_nchw.shape[0]
    x = x_nchw.reshape(B, -1)                       # == x.view(x.shape[0], -1)
    assert x.shape[1] == 784

    w1, b1, w2, b2, w3, b3, w4, b4 = params

    # One-time weight prep (tiny, VMEM-resident): bf16 MXU weights; fc3 output
    # padded 64 -> 128 so h3 is lane-dense and fc4 contracts over K=128.
    w1k = w1.astype(jnp.bfloat16)                               # (784, 256)
    w2k = w2.astype(jnp.bfloat16)                               # (256, 128)
    w3k = jnp.pad(w3.astype(jnp.bfloat16), ((0, 0), (0, 64)))   # (128, 128)
    b3k = jnp.pad(b3, ((0, 0), (0, 64)))                        # (1, 128)
    w4k = jnp.pad(w4.astype(jnp.bfloat16), ((0, 64), (0, 0)))   # (128, 10)
    b1k, b2k, b4k = b1, b2, b4                                  # f32 biases

    TM = _pick_tile(B)
    grid = (pl.cdiv(B, TM),)

    resident = lambda shape: pl.BlockSpec(shape, lambda i: (0, 0))  # noqa: E731

    flops = 2 * B * (784 * 256 + 256 * 128 + 128 * 64 + 64 * 10)
    bytes_accessed = (B * 784 * 4                        # x (f32)
                      + (784 * 256 + 256 * 128 + 128 * 128 + 128 * 10) * 2  # bf16 W
                      + (256 + 128 + 128 + 10) * 4       # biases
                      + B * 10 * 4)                      # output
    cost = pl.CostEstimate(flops=flops, transcendentals=B * 10,
                           bytes_accessed=bytes_accessed)

    out = pl.pallas_call(
        _mlp_kernel,
        out_shape=jax.ShapeDtypeStruct((B, 10), jnp.float32),
        grid=grid,
        in_specs=[
            pl.BlockSpec((TM, 784), lambda i: (i, 0)),   # x tile, double-buffered
            resident(w1k.shape), resident(b1k.shape),
            resident(w2k.shape), resident(b2k.shape),
            resident(w3k.shape), resident(b3k.shape),
            resident(w4k.shape), resident(b4k.shape),
        ],
        out_specs=pl.BlockSpec((TM, 10), lambda i: (i, 0)),
        compiler_params=pltpu.CompilerParams(
            dimension_semantics=("parallel",),
            vmem_limit_bytes=32 * 1024 * 1024),
        cost_estimate=cost,
    )(x, w1k, b1k, w2k, b2k, w3k, b3k, w4k, b4k)

    return out


def init_params(key):
    """Init matching torch nn.Linear default (U[-1/sqrt(fan_in), +1/sqrt(fan_in)]).

    Weights are stored as (in_features, out_features) for the kernel's x @ W layout.
    Biases are stored as (1, out_features) for clean 2-D broadcasting on TPU.
    """
    dims = [(784, 256), (256, 128), (128, 64), (64, 10)]
    params = []
    keys = jax.random.split(key, 2 * len(dims))
    for i, (fan_in, fan_out) in enumerate(dims):
        bound = 1.0 / jnp.sqrt(jnp.float32(fan_in))
        w = jax.random.uniform(keys[2 * i], (fan_in, fan_out),
                               minval=-bound, maxval=bound, dtype=jnp.float32)
        b = jax.random.uniform(keys[2 * i + 1], (1, fan_out),
                               minval=-bound, maxval=bound, dtype=jnp.float32)
        params.extend([w, b])
    return tuple(params)


def _reference_forward(x_nchw, params):
    """Pure-JAX f32 reference (mirrors the PyTorch forward)."""
    w1, b1, w2, b2, w3, b3, w4, b4 = params
    x = x_nchw.reshape(x_nchw.shape[0], -1)
    h = jax.nn.relu(x @ w1 + b1)
    h = jax.nn.relu(h @ w2 + b2)
    h = jax.nn.relu(h @ w3 + b3)
    return jax.nn.log_softmax(h @ w4 + b4, axis=1)


if __name__ == "__main__":
    key = jax.random.PRNGKey(0)
    k_x, k_p = jax.random.split(key)

    B = 8
    x = jax.random.normal(k_x, (B, 1, 28, 28), dtype=jnp.float32)
    params = init_params(k_p)

    out = classifier_catdogs_forward(x, params)
    out = jax.block_until_ready(out)

    ref = _reference_forward(x, params)
    assert out.shape == (B, 10)
    # bf16 matmul inputs (f32 accumulation): expect ~1e-2 abs on log-probs.
    assert jnp.allclose(out, ref, atol=5e-2, rtol=0.0), float(
        jnp.max(jnp.abs(out - ref)))

    print("KERNEL_OK")
</pallas_src>

<mosaic_0001>
module attributes {stable_mosaic.version = 11 : i64} {
  func.func @_mlp_kernel(%arg0: i32, %arg1: memref<8x784xf32, #tpu.memory_space<vmem>>, %arg2: memref<784x256xbf16, #tpu.memory_space<vmem>>, %arg3: memref<1x256xf32, #tpu.memory_space<vmem>>, %arg4: memref<256x128xbf16, #tpu.memory_space<vmem>>, %arg5: memref<1x128xf32, #tpu.memory_space<vmem>>, %arg6: memref<128x128xbf16, #tpu.memory_space<vmem>>, %arg7: memref<1x128xf32, #tpu.memory_space<vmem>>, %arg8: memref<128x10xbf16, #tpu.memory_space<vmem>>, %arg9: memref<1x10xf32, #tpu.memory_space<vmem>>, %arg10: memref<8x10xf32, #tpu.memory_space<vmem>>) attributes {dimension_semantics = [#tpu.dimension_semantics<parallel>], iteration_bounds = array<i64: 1>, scalar_prefetch = 0 : i64, scratch_operands = 0 : i64, tpu.core_type = #tpu.core_type<tc>, window_params = [{transform_indices = @transform_0, window_bounds = array<i64: 8, 784>}, {pipeline_mode = #tpu.pipeline_mode<synchronous>, transform_indices = @transform_1, window_bounds = array<i64: 784, 256>}, {pipeline_mode = #tpu.pipeline_mode<synchronous>, transform_indices = @transform_2, window_bounds = array<i64: 1, 256>}, {pipeline_mode = #tpu.pipeline_mode<synchronous>, transform_indices = @transform_3, window_bounds = array<i64: 256, 128>}, {pipeline_mode = #tpu.pipeline_mode<synchronous>, transform_indices = @transform_4, window_bounds = array<i64: 1, 128>}, {pipeline_mode = #tpu.pipeline_mode<synchronous>, transform_indices = @transform_5, window_bounds = array<i64: 128, 128>}, {pipeline_mode = #tpu.pipeline_mode<synchronous>, transform_indices = @transform_6, window_bounds = array<i64: 1, 128>}, {pipeline_mode = #tpu.pipeline_mode<synchronous>, transform_indices = @transform_7, window_bounds = array<i64: 128, 10>}, {pipeline_mode = #tpu.pipeline_mode<synchronous>, transform_indices = @transform_8, window_bounds = array<i64: 1, 10>}, {transform_indices = @transform_9, window_bounds = array<i64: 8, 10>}]} {
    %c0 = arith.constant 0 : index
    %c0_0 = arith.constant 0 : index
    %0 = vector.load %arg1[%c0, %c0_0] : memref<8x784xf32, #tpu.memory_space<vmem>>, vector<8x784xf32>
    %1 = arith.truncf %0 : vector<8x784xf32> to vector<8x784xbf16>
    %c0_1 = arith.constant 0 : index
    %c0_2 = arith.constant 0 : index
    %2 = vector.load %arg2[%c0_1, %c0_2] : memref<784x256xbf16, #tpu.memory_space<vmem>>, vector<784x256xbf16>
    %cst = arith.constant dense<0.000000e+00> : vector<8x256xf32>
    %3 = tpu.matmul %1, %2, %cst {dimension_numbers = #tpu.dot_dimension_numbers<[1], [0], [0], [1], [0, 0, 1, 1], [], []>} : vector<8x784xbf16>, vector<784x256xbf16>, vector<8x256xf32> -> vector<8x256xf32>
    %c0_3 = arith.constant 0 : index
    %c0_4 = arith.constant 0 : index
    %4 = vector.load %arg3[%c0_3, %c0_4] : memref<1x256xf32, #tpu.memory_space<vmem>>, vector<1x256xf32>
    %5 = vector.broadcast %4 : vector<1x256xf32> to vector<8x256xf32>
    %6 = arith.addf %3, %5 : vector<8x256xf32>
    %cst_5 = arith.constant 0.000000e+00 : f32
    %7 = vector.broadcast %cst_5 : f32 to vector<8x256xf32>
    %8 = arith.maximumf %6, %7 : vector<8x256xf32>
    %9 = arith.truncf %8 : vector<8x256xf32> to vector<8x256xbf16>
    %c0_6 = arith.constant 0 : index
    %c0_7 = arith.constant 0 : index
    %10 = vector.load %arg4[%c0_6, %c0_7] : memref<256x128xbf16, #tpu.memory_space<vmem>>, vector<256x128xbf16>
    %cst_8 = arith.constant dense<0.000000e+00> : vector<8x128xf32>
    %11 = tpu.matmul %9, %10, %cst_8 {dimension_numbers = #tpu.dot_dimension_numbers<[1], [0], [0], [1], [0, 0, 1, 1], [], []>} : vector<8x256xbf16>, vector<256x128xbf16>, vector<8x128xf32> -> vector<8x128xf32>
    %c0_9 = arith.constant 0 : index
    %c0_10 = arith.constant 0 : index
    %12 = vector.load %arg5[%c0_9, %c0_10] : memref<1x128xf32, #tpu.memory_space<vmem>>, vector<1x128xf32>
    %13 = vector.broadcast %12 : vector<1x128xf32> to vector<8x128xf32>
    %14 = arith.addf %11, %13 : vector<8x128xf32>
    %cst_11 = arith.constant 0.000000e+00 : f32
    %15 = vector.broadcast %cst_11 : f32 to vector<8x128xf32>
    %16 = arith.maximumf %14, %15 : vector<8x128xf32>
    %17 = arith.truncf %16 : vector<8x128xf32> to vector<8x128xbf16>
    %c0_12 = arith.constant 0 : index
    %c0_13 = arith.constant 0 : index
    %18 = vector.load %arg6[%c0_12, %c0_13] : memref<128x128xbf16, #tpu.memory_space<vmem>>, vector<128x128xbf16>
    %cst_14 = arith.constant dense<0.000000e+00> : vector<8x128xf32>
    %19 = tpu.matmul %17, %18, %cst_14 {dimension_numbers = #tpu.dot_dimension_numbers<[1], [0], [0], [1], [0, 0, 1, 1], [], []>} : vector<8x128xbf16>, vector<128x128xbf16>, vector<8x128xf32> -> vector<8x128xf32>
    %c0_15 = arith.constant 0 : index
    %c0_16 = arith.constant 0 : index
    %20 = vector.load %arg7[%c0_15, %c0_16] : memref<1x128xf32, #tpu.memory_space<vmem>>, vector<1x128xf32>
    %21 = vector.broadcast %20 : vector<1x128xf32> to vector<8x128xf32>
    %22 = arith.addf %19, %21 : vector<8x128xf32>
    %cst_17 = arith.constant 0.000000e+00 : f32
    %23 = vector.broadcast %cst_17 : f32 to vector<8x128xf32>
    %24 = arith.maximumf %22, %23 : vector<8x128xf32>
    %25 = arith.truncf %24 : vector<8x128xf32> to vector<8x128xbf16>
    %c0_18 = arith.constant 0 : index
    %c0_19 = arith.constant 0 : index
    %26 = vector.load %arg8[%c0_18, %c0_19] : memref<128x10xbf16, #tpu.memory_space<vmem>>, vector<128x10xbf16>
    %cst_20 = arith.constant dense<0.000000e+00> : vector<8x10xf32>
    %27 = tpu.matmul %25, %26, %cst_20 {dimension_numbers = #tpu.dot_dimension_numbers<[1], [0], [0], [1], [0, 0, 1, 1], [], []>} : vector<8x128xbf16>, vector<128x10xbf16>, vector<8x10xf32> -> vector<8x10xf32>
    %c0_21 = arith.constant 0 : index
    %c0_22 = arith.constant 0 : index
    %28 = vector.load %arg9[%c0_21, %c0_22] : memref<1x10xf32, #tpu.memory_space<vmem>>, vector<1x10xf32>
    %29 = vector.broadcast %28 : vector<1x10xf32> to vector<8x10xf32>
    %30 = arith.addf %27, %29 : vector<8x10xf32>
    %cst_23 = arith.constant dense<0xFF800000> : vector<8xf32>
    %31 = vector.multi_reduction <maximumf>, %30, %cst_23 [1] : vector<8x10xf32> to vector<8xf32>
    %32 = vector.shape_cast %31 : vector<8xf32> to vector<8x1xf32>
    %33 = vector.broadcast %32 : vector<8x1xf32> to vector<8x10xf32>
    %34 = arith.subf %30, %33 : vector<8x10xf32>
    %35 = math.exp %34 : vector<8x10xf32>
    %cst_24 = arith.constant dense<0.000000e+00> : vector<8xf32>
    %36 = vector.multi_reduction <add>, %35, %cst_24 [1] : vector<8x10xf32> to vector<8xf32>
    %37 = vector.shape_cast %36 : vector<8xf32> to vector<8x1xf32>
    %38 = math.log %37 : vector<8x1xf32>
    %39 = vector.broadcast %38 : vector<8x1xf32> to vector<8x10xf32>
    %40 = arith.subf %34, %39 : vector<8x10xf32>
    %c0_25 = arith.constant 0 : index
    %c0_26 = arith.constant 0 : index
    %41 = vector.load %arg10[%c0_25, %c0_26] : memref<8x10xf32, #tpu.memory_space<vmem>>, vector<8x10xf32>
    tpu.vector_store %arg10[%c0_25, %c0_26], %40 {strides = array<i32>} : memref<8x10xf32, #tpu.memory_space<vmem>>, vector<8x10xf32>,
    return
  }
  func.func @transform_0(%arg0: i32) -> (i32, i32) {
    %c0_i32 = arith.constant 0 : i32
    %c0_i32_0 = arith.constant 0 : i32
    return %arg0, %c0_i32 : i32, i32
  }
  func.func @transform_1(%arg0: i32) -> (i32, i32) {
    %c0_i32 = arith.constant 0 : i32
    %c0_i32_0 = arith.constant 0 : i32
    %c0_i32_1 = arith.constant 0 : i32
    return %c0_i32, %c0_i32_0 : i32, i32
  }
  func.func @transform_2(%arg0: i32) -> (i32, i32) {
    %c0_i32 = arith.constant 0 : i32
    %c0_i32_0 = arith.constant 0 : i32
    %c0_i32_1 = arith.constant 0 : i32
    return %c0_i32, %c0_i32_0 : i32, i32
  }
  func.func @transform_3(%arg0: i32) -> (i32, i32) {
    %c0_i32 = arith.constant 0 : i32
    %c0_i32_0 = arith.constant 0 : i32
    %c0_i32_1 = arith.constant 0 : i32
    return %c0_i32, %c0_i32_0 : i32, i32
  }
  func.func @transform_4(%arg0: i32) -> (i32, i32) {
    %c0_i32 = arith.constant 0 : i32
    %c0_i32_0 = arith.constant 0 : i32
    %c0_i32_1 = arith.constant 0 : i32
    return %c0_i32, %c0_i32_0 : i32, i32
  }
  func.func @transform_5(%arg0: i32) -> (i32, i32) {
    %c0_i32 = arith.constant 0 : i32
    %c0_i32_0 = arith.constant 0 : i32
    %c0_i32_1 = arith.constant 0 : i32
    return %c0_i32, %c0_i32_0 : i32, i32
  }
  func.func @transform_6(%arg0: i32) -> (i32, i32) {
    %c0_i32 = arith.constant 0 : i32
    %c0_i32_0 = arith.constant 0 : i32
    %c0_i32_1 = arith.constant 0 : i32
    return %c0_i32, %c0_i32_0 : i32, i32
  }
  func.func @transform_7(%arg0: i32) -> (i32, i32) {
    %c0_i32 = arith.constant 0 : i32
    %c0_i32_0 = arith.constant 0 : i32
    %c0_i32_1 = arith.constant 0 : i32
    return %c0_i32, %c0_i32_0 : i32, i32
  }
  func.func @transform_8(%arg0: i32) -> (i32, i32) {
    %c0_i32 = arith.constant 0 : i32
    %c0_i32_0 = arith.constant 0 : i32
    %c0_i32_1 = arith.constant 0 : i32
    return %c0_i32, %c0_i32_0 : i32, i32
  }
  func.func @transform_9(%arg0: i32) -> (i32, i32) {
    %c0_i32 = arith.constant 0 : i32
    %c0_i32_0 = arith.constant 0 : i32
    return %arg0, %c0_i32 : i32, i32
  }
}

</mosaic_0001>

<bundles_post_ra>
// kernel: classifier_catdogs_forward.1
= control target key start
LH: loop header
LB: loop body
LE: loop exit
PB: predicated region body
PF: predicated region fallthrough
CT: control target
= control target key end

     0   :  { %s2196_s0 = inlined_call_operand.vmem [shape: f32[8,784], index: 0, kind: input, shape index: {}]   ;;  %s2197_s1 = inlined_call_operand.vmem [shape: bf16[784,256], index: 1, kind: input, shape index: {}]   ;;  %s2198_s2 = inlined_call_operand.vmem [shape: f32[1,256], index: 2, kind: input, shape index: {}]   ;;  %s2199_s3 = inlined_call_operand.vmem [shape: bf16[256,128], index: 3, kind: input, shape index: {}]   ;;  %s2200_s4 = inlined_call_operand.vmem [shape: f32[1,128], index: 4, kind: input, shape index: {}]   ;;  %s2201_s5 = inlined_call_operand.vmem [shape: bf16[128,128], index: 5, kind: input, shape index: {}]   ;;  %s2202_s6 = inlined_call_operand.vmem [shape: f32[1,128], index: 6, kind: input, shape index: {}]   ;;  %s2203_s7 = inlined_call_operand.vmem [shape: bf16[128,10], index: 7, kind: input, shape index: {}]   ;;  %s2204_s8 = inlined_call_operand.vmem [shape: f32[1,10], index: 8, kind: input, shape index: {}]   ;;  %s2205_s9 = inlined_call_operand.hbm [shape: f32[8,10], index: 9, kind: output, shape index: {}]  }
   0x1   :  { %v1479_v0 = vld [vmem:[%s2197_s1 + $0x104] ss:$8 sps:$4 sm:$0xff]   ;;  %v1481_v1 = vld [vmem:[%s2197_s1 + $0x100] ss:$8 sps:$4 sm:$0xff]   ;;  %v1482_v2 = vld [vmem:[%s2197_s1 + $0x114] ss:$8 sps:$4 sm:$0xff]  }
   0x2   :  { %693 = vmatprep.subr.bf16.mxu0 %v1479_v0  ;;  %v1484_v3 = vld [vmem:[%s2197_s1 + $0x110] ss:$8 sps:$4 sm:$0xff]   ;;  %v1485_v4 = vld [vmem:[%s2197_s1 + $0x124] ss:$8 sps:$4 sm:$0xff]   ;;  %v1487_v5 = vld [vmem:[%s2197_s1 + $0x120] ss:$8 sps:$4 sm:$0xff]  }
   0x3   :  { %694 = vmatpush1.bf16.msra.mxu0 %v1481_v1  ;;  %v1488_v6 = vld [vmem:[%s2197_s1 + $0x134] ss:$8 sps:$4 sm:$0xff]   ;;  %v1490_v7 = vld [vmem:[%s2197_s1 + $0x130] ss:$8 sps:$4 sm:$0xff]   ;;  %v1491_v8 = vld [vmem:[%s2197_s1 + $0x144] ss:$8 sps:$4 sm:$0xff]  }
   0x4   :  { %695 = vmatprep.subr.bf16.mxu0 %v1482_v2  ;;  %v1493_v9 = vld [vmem:[%s2197_s1 + $0x140] ss:$8 sps:$4 sm:$0xff]   ;;  %v1494_v10 = vld [vmem:[%s2197_s1 + $0x154] ss:$8 sps:$4 sm:$0xff]   ;;  %v1496_v11 = vld [vmem:[%s2197_s1 + $0x150] ss:$8 sps:$4 sm:$0xff]  }
   0x5   :  { %v1497_v12 = vld [vmem:[%s2197_s1 + $0x164] ss:$8 sps:$4 sm:$0xff]   ;;  %v37_v13 = vld [vmem:[%s2196_s0 + $0x18] sm:$0xff]  ;;  %v1499_v15 = vld [vmem:[%s2197_s1 + $0x160] ss:$8 sps:$4 sm:$0xff]  }
   0x6   :  { %v44_v14 = vpack.c.bf16 %v37_v13, %v37_v13  ;;  %v1500_v16 = vld [vmem:[%s2197_s1 + $0x174] ss:$8 sps:$4 sm:$0xff]   ;;  %v1533_v17 = vld [vmem:[%s2197_s1 + $0x4] ss:$8 sps:$4 sm:$0xff]   ;;  %v1502_v18 = vld [vmem:[%s2197_s1 + $0x170] ss:$8 sps:$4 sm:$0xff]  }
   0x7   :  { %696 = vmatpush1.bf16.msra.mxu0 %v1484_v3  ;;  %v1503_v19 = vld [vmem:[%s2197_s1 + $0x184] ss:$8 sps:$4 sm:$0xff]   ;;  %652 = vmatprep.subr.bf16.mxu1 %v1533_v17  ;;  %v1538_v20 = vld [vmem:[%s2197_s1] ss:$8 sps:$4 sm:$0xff]   ;;  %v1539_v21 = vld [vmem:[%s2197_s1 + $0x14] ss:$8 sps:$4 sm:$0xff]  }
   0x8   :  { %697 = vmatprep.subr.bf16.mxu0 %v1485_v4  ;;  %725 = vmatprep.mubr.bf16.mxu0 %v44_v14  ;;  %v1544_v22 = vld [vmem:[%s2197_s1 + $0x10] ss:$8 sps:$4 sm:$0xff]   ;;  %v1545_v23 = vld [vmem:[%s2197_s1 + $0x24] ss:$8 sps:$4 sm:$0xff]   ;;  %v1505_v24 = vld [vmem:[%s2197_s1 + $0x180] ss:$8 sps:$4 sm:$0xff]  }
   0x9   :  { %653 = vmatpush1.bf16.msra.mxu1 %v1538_v20  ;;  %v1506_v25 = vld [vmem:[%s2197_s1 + $0x194] ss:$8 sps:$4 sm:$0xff]   ;;  %v1550_v26 = vld [vmem:[%s2197_s1 + $0x20] ss:$8 sps:$4 sm:$0xff]   ;;  %v1508_v28 = vld [vmem:[%s2197_s1 + $0x190] ss:$8 sps:$4 sm:$0xff]  }
   0xa   :  { %654 = vmatprep.subr.bf16.mxu1 %v1539_v21  ;;  %v1551_v27 = vld [vmem:[%s2197_s1 + $0x34] ss:$8 sps:$4 sm:$0xff]   ;;  %v1509_v29 = vld [vmem:[%s2197_s1 + $0x1a4] ss:$8 sps:$4 sm:$0xff]   ;;  %v1556_v30 = vld [vmem:[%s2197_s1 + $0x30] ss:$8 sps:$4 sm:$0xff]  }
   0xb   :  { %698 = vmatpush1.bf16.msra.mxu0 %v1487_v5  ;;  %v1557_v31 = vld [vmem:[%s2197_s1 + $0x44] ss:$8 sps:$4 sm:$0xff]   ;;  %v1511_v32 = vld [vmem:[%s2197_s1 + $0x1a0] ss:$8 sps:$4 sm:$0xff]   ;;  %v1512_v33 = vld [vmem:[%s2197_s1 + $0x1b4] ss:$8 sps:$4 sm:$0xff]  }
   0xc   :  { %699 = vmatprep.subr.bf16.mxu0 %v1488_v6  ;;  %v1562_v34 = vld [vmem:[%s2197_s1 + $0x40] ss:$8 sps:$4 sm:$0xff]   ;;  %v1563_v35 = vld [vmem:[%s2197_s1 + $0x54] ss:$8 sps:$4 sm:$0xff]   ;;  %v1514_v36 = vld [vmem:[%s2197_s1 + $0x1b0] ss:$8 sps:$4 sm:$0xff]  }
   0xd   :  { %655 = vmatpush1.bf16.msra.mxu1 %v1544_v22  ;;  %v1515_v37 = vld [vmem:[%s2197_s1 + $0x1c4] ss:$8 sps:$4 sm:$0xff]   ;;  %v1568_v38 = vld [vmem:[%s2197_s1 + $0x50] ss:$8 sps:$4 sm:$0xff]   ;;  %v1517_v40 = vld [vmem:[%s2197_s1 + $0x1c0] ss:$8 sps:$4 sm:$0xff]  }
   0xe   :  { %656 = vmatprep.subr.bf16.mxu1 %v1545_v23  ;;  %v1569_v39 = vld [vmem:[%s2197_s1 + $0x64] ss:$8 sps:$4 sm:$0xff]   ;;  %v1518_v41 = vld [vmem:[%s2197_s1 + $0x1d4] ss:$8 sps:$4 sm:$0xff]   ;;  %v1574_v42 = vld [vmem:[%s2197_s1 + $0x60] ss:$8 sps:$4 sm:$0xff]  }
   0xf   :  { %700 = vmatpush1.bf16.msra.mxu0 %v1490_v7  ;;  %v1575_v43 = vld [vmem:[%s2197_s1 + $0x74] ss:$8 sps:$4 sm:$0xff]   ;;  %v1520_v44 = vld [vmem:[%s2197_s1 + $0x1d0] ss:$8 sps:$4 sm:$0xff]   ;;  %v1521_v45 = vld [vmem:[%s2197_s1 + $0x1e4] ss:$8 sps:$4 sm:$0xff]  }
  0x10   :  { %701 = vmatprep.subr.bf16.mxu0 %v1491_v8  ;;  %v1580_v46 = vld [vmem:[%s2197_s1 + $0x70] ss:$8 sps:$4 sm:$0xff]   ;;  %v1581_v47 = vld [vmem:[%s2197_s1 + $0x84] ss:$8 sps:$4 sm:$0xff]   ;;  %v1523_v48 = vld [vmem:[%s2197_s1 + $0x1e0] ss:$8 sps:$4 sm:$0xff]  }
  0x11   :  { %657 = vmatpush1.bf16.msra.mxu1 %v1550_v26  ;;  %v1524_v49 = vld [vmem:[%s2197_s1 + $0x1f4] ss:$8 sps:$4 sm:$0xff]   ;;  %v1586_v50 = vld [vmem:[%s2197_s1 + $0x80] ss:$8 sps:$4 sm:$0xff]   ;;  %v1526_v51 = vld [vmem:[%s2197_s1 + $0x1f0] ss:$8 sps:$4 sm:$0xff]  }
  0x12   :  { %658 = vmatprep.subr.bf16.mxu1 %v1551_v27  ;;  %v1587_v52 = vld [vmem:[%s2197_s1 + $0x94] ss:$8 sps:$4 sm:$0xff]   ;;  %v1529_v54 = vld [vmem:[%s2197_s1 + $0x204] ss:$8 sps:$4 sm:$0xff]   ;;  %v1592_v55 = vld [vmem:[%s2197_s1 + $0x90] ss:$8 sps:$4 sm:$0xff]  }
  0x13   :  { %702 = vmatpush1.bf16.msra.mxu0 %v1493_v9  ;;  %v36_v53 = vld [vmem:[%s2196_s0 + $0x10] sm:$0xff]  ;;  %v1593_v56 = vld [vmem:[%s2197_s1 + $0xa4] ss:$8 sps:$4 sm:$0xff]   ;;  %v1527_v59 = vld [vmem:[%s2197_s1 + $0x200] ss:$8 sps:$4 sm:$0xff]  }
  0x14   :  { %703 = vmatprep.subr.bf16.mxu0 %v1494_v10  ;;  %v43_v57 = vpack.c.bf16 %v36_v53, %v36_v53  ;;  %v39_v58 = vld [vmem:[%s2196_s0 + $0x28] sm:$0xff]  ;;  %v1532_v61 = vld [vmem:[%s2197_s1 + $0x214] ss:$8 sps:$4 sm:$0xff]   ;;  %v1530_v1 = vld [vmem:[%s2197_s1 + $0x210] ss:$8 sps:$4 sm:$0xff]  }
  0x15   :  { %659 = vmatpush1.bf16.msra.mxu1 %v1556_v30  ;;  %v46_v60 = vpack.c.bf16 %v39_v58, %v39_v58  ;;  %v1598_v62 = vld [vmem:[%s2197_s1 + $0xa0] ss:$8 sps:$4 sm:$0xff]   ;;  %v1599_v63 = vld [vmem:[%s2197_s1 + $0xb4] ss:$8 sps:$4 sm:$0xff]   ;;  %v1537_v3 = vld [vmem:[%s2197_s1 + $0x224] ss:$8 sps:$4 sm:$0xff]  }
  0x16   :  { %660 = vmatprep.subr.bf16.mxu1 %v1557_v31  ;;  %v35_v0 = vld [vmem:[%s2196_s0 + $0x8] sm:$0xff]  ;;  %v1604_v4 = vld [vmem:[%s2197_s1 + $0xb0] ss:$8 sps:$4 sm:$0xff]   ;;  %v1543_v7 = vld [vmem:[%s2197_s1 + $0x234] ss:$8 sps:$4 sm:$0xff]  }
  0x17   :  { %704 = vmatpush1.bf16.msra.mxu0 %v1496_v11  ;;  %v42_v2 = vpack.c.bf16 %v35_v0, %v35_v0  ;;  %v1605_v5 = vld [vmem:[%s2197_s1 + $0xc4] ss:$8 sps:$4 sm:$0xff]   ;;  %v1535_v6 = vld [vmem:[%s2197_s1 + $0x220] ss:$8 sps:$4 sm:$0xff]   ;;  %v1611_v9 = vld [vmem:[%s2197_s1 + $0xd4] ss:$8 sps:$4 sm:$0xff]  }
  0x18   :  { %705 = vmatprep.subr.bf16.mxu0 %v1497_v12  ;;  %v1610_v8 = vld [vmem:[%s2197_s1 + $0xc0] ss:$8 sps:$4 sm:$0xff]   ;;  %v1541_v10 = vld [vmem:[%s2197_s1 + $0x230] ss:$8 sps:$4 sm:$0xff]   ;;  %v1549_v11 = vld [vmem:[%s2197_s1 + $0x244] ss:$8 sps:$4 sm:$0xff]  }
  0x19   :  { %661 = vmatpush1.bf16.msra.mxu1 %v1562_v34  ;;  %684 = vmatprep.mubr.bf16.mxu1 %v42_v2  ;;  %v1547_v12 = vld [vmem:[%s2197_s1 + $0x240] ss:$8 sps:$4 sm:$0xff]   ;;  %v1616_v13 = vld [vmem:[%s2197_s1 + $0xd0] ss:$8 sps:$4 sm:$0xff]   ;;  %v1617_v14 = vld [vmem:[%s2197_s1 + $0xe4] ss:$8 sps:$4 sm:$0xff]  }
  0x1a   :  { %662 = vmatprep.subr.bf16.mxu1 %v1563_v35  ;;  %v1623_v17 = vld [vmem:[%s2197_s1 + $0xf4] ss:$8 sps:$4 sm:$0xff]   ;;  %v1625_v20 = vld [vmem:[%s2197_s1 + $0xf0] ss:$8 sps:$4 sm:$0xff]   ;;  %v34_v21 = vld [vmem:[%s2196_s0] sm:$0xff] }
  0x1b   :  { %706 = vmatpush1.bf16.msra.mxu0 %v1499_v15  ;;  %v1555_v15 = vld [vmem:[%s2197_s1 + $0x254] ss:$8 sps:$4 sm:$0xff]   ;;  %v1626_v22 = vld [vmem:[%s2199_s3 + $0x40] sm:$0xff]   ;;  %v41_v26 = vpack.c.bf16 %v34_v21, %v34_v21  ;;  %v1628_v27 = vld [vmem:[%s2199_s3 + $0x48] sm:$0xff]  }
  0x1c   :  { %707 = vmatprep.subr.bf16.mxu0 %v1500_v16  ;;  %v1622_v16 = vld [vmem:[%s2197_s1 + $0xe0] ss:$8 sps:$4 sm:$0xff]  }
  0x1d   :  { %663 = vmatpush1.bf16.msra.mxu1 %v1568_v38  ;;  %v1559_v23 = vld [vmem:[%s2197_s1 + $0x260] ss:$8 sps:$4 sm:$0xff]  }
  0x1e   :  { %664 = vmatprep.subr.bf16.mxu1 %v1569_v39 }
  0x1f   :  { %708 = vmatpush1.bf16.msra.mxu0 %v1502_v18  ;;  %v1553_v18 = vld [vmem:[%s2197_s1 + $0x250] ss:$8 sps:$4 sm:$0xff]  }
  0x20   :  { %709 = vmatprep.subr.bf16.mxu0 %v1503_v19  ;;  %v1561_v19 = vld [vmem:[%s2197_s1 + $0x264] ss:$8 sps:$4 sm:$0xff]  }
  0x21   :  { %665 = vmatpush1.bf16.msra.mxu1 %v1574_v42 }
  0x22   :  { %666 = vmatprep.subr.bf16.mxu1 %v1575_v43 }
  0x23   :  { %710 = vmatpush1.bf16.msra.mxu0 %v1505_v24  ;;  %v1567_v24 = vld [vmem:[%s2197_s1 + $0x274] ss:$8 sps:$4 sm:$0xff]  }
  0x24   :  { %711 = vmatprep.subr.bf16.mxu0 %v1506_v25  ;;  %v1627_v25 = vld [vmem:[%s2199_s3] sm:$0xff]  }
  0x25   :  { %667 = vmatpush1.bf16.msra.mxu1 %v1580_v46 }
  0x26   :  { %668 = vmatprep.subr.bf16.mxu1 %v1581_v47 }
  0x27   :  { %712 = vmatpush1.bf16.msra.mxu0 %v1508_v28  ;;  %v1565_v28 = vld [vmem:[%s2197_s1 + $0x270] ss:$8 sps:$4 sm:$0xff]  }
  0x28   :  { %713 = vmatprep.subr.bf16.mxu0 %v1509_v29  ;;  %v1573_v29 = vld [vmem:[%s2197_s1 + $0x284] ss:$8 sps:$4 sm:$0xff]  }
  0x29   :  { %669 = vmatpush1.bf16.msra.mxu1 %v1586_v50 }
  0x2a   :  { %670 = vmatprep.subr.bf16.mxu1 %v1587_v52 }
  0x2b   :  { %714 = vmatpush1.bf16.msra.mxu0 %v1511_v32 }
  0x2c   :  { %715 = vmatprep.subr.bf16.mxu0 %v1512_v33 }
  0x2d   :  { %671 = vmatpush1.bf16.msra.mxu1 %v1592_v55 }
  0x2e   :  { %672 = vmatprep.subr.bf16.mxu1 %v1593_v56 }
  0x2f   :  { %716 = vmatpush1.bf16.msra.mxu0 %v1514_v36 }
  0x30   :  { %717 = vmatprep.subr.bf16.mxu0 %v1515_v37 }
  0x31   :  { %673 = vmatpush1.bf16.msra.mxu1 %v1598_v62 }
  0x32   :  { %674 = vmatprep.subr.bf16.mxu1 %v1599_v63 }
  0x33   :  { %718 = vmatpush1.bf16.msra.mxu0 %v1517_v40 }
  0x34   :  { %719 = vmatprep.subr.bf16.mxu0 %v1518_v41 }
  0x35   :  { %675 = vmatpush1.bf16.msra.mxu1 %v1604_v4 }
  0x36   :  { %676 = vmatprep.subr.bf16.mxu1 %v1605_v5 }
  0x37   :  { %720 = vmatpush1.bf16.msra.mxu0 %v1520_v44 }
  0x38   :  { %721 = vmatprep.subr.bf16.mxu0 %v1521_v45 }
  0x39   :  { %677 = vmatpush1.bf16.msra.mxu1 %v1610_v8 }
  0x3a   :  { %678 = vmatprep.subr.bf16.mxu1 %v1611_v9 }
  0x3b   :  { %722 = vmatpush1.bf16.msra.mxu0 %v1523_v48 }
  0x3c   :  { %723 = vmatprep.subr.bf16.mxu0 %v1524_v49 }
  0x3d   :  { %679 = vmatpush1.bf16.msra.mxu1 %v1616_v13 }
  0x3e   :  { %680 = vmatprep.subr.bf16.mxu1 %v1617_v14 }
  0x3f   :  { %724 = vmatpush1.bf16.msra.mxu0 %v1526_v51 }
  0x40   :  { %734 = vmatprep.subr.bf16.mxu0 %v1529_v54 }
  0x41   :  { %681 = vmatpush1.bf16.msra.mxu1 %v1622_v16 }
  0x42   :  { %726 = vmatmul.mubr.bf16.vlgmr.msra.gmra.mrb[0].mxu0 %v43_v57  ;;  %682 = vmatprep.subr.bf16.mxu1 %v1623_v17 }
  0x43   :  { %735 = vmatpush1.bf16.msra.mxu0 %v1527_v59  ;;  %766 = vmatprep.mubr.bf16.mxu0 %v46_v60 }
  0x44   :  { %736 = vmatprep.subr.bf16.mxu0 %v1532_v61 }
  0x45   :  { %683 = vmatpush1.bf16.msra.mxu1 %v1625_v20 }
  0x46   :  { %1383 = vmatprep.subr.bf16.mxu1 %v1626_v22 }
  0x47   :  { %737 = vmatpush1.bf16.msra.mxu0 %v1530_v1 }
  0x48   :  { %738 = vmatprep.subr.bf16.mxu0 %v1537_v3  ;;  %685 = vmatmul.mubr.bf16.vlgmr.msra.gmra.mrb[0].mxu1 %v41_v26 }
  0x4b   :  { %739 = vmatpush1.bf16.msra.mxu0 %v1535_v6 }
  0x4c   :  { %740 = vmatprep.subr.bf16.mxu0 %v1543_v7 }
  0x4f   :  { %741 = vmatpush1.bf16.msra.mxu0 %v1541_v10 }
  0x50   :  { %742 = vmatprep.subr.bf16.mxu0 %v1549_v11 }
  0x53   :  { %743 = vmatpush1.bf16.msra.mxu0 %v1547_v12 }
  0x54   :  { %744 = vmatprep.subr.bf16.mxu0 %v1555_v15 }
  0x57   :  { %745 = vmatpush1.bf16.msra.mxu0 %v1553_v18 }
  0x58   :  { %746 = vmatprep.subr.bf16.mxu0 %v1561_v19 }
  0x5b   :  { %747 = vmatpush1.bf16.msra.mxu0 %v1559_v23 }
  0x5c   :  { %748 = vmatprep.subr.bf16.mxu0 %v1567_v24 }
  0x5d   :  { %14 = vsyncpa [#allocation3], 0  ;;  %1384 = vmatpush3.bf16.msra.mxu1 %v1627_v25  ;;  %v1629_v30 = vld [vmem:[%s2199_s3 + $0x8] sm:$0xff]   ;;  %v1630_v31 = vld [vmem:[%s2199_s3 + $0x50] sm:$0xff]   ;;  %v1686_v56 = vmov 0   ;;  %vm648_vm0 = vcmask 130048   ;;  %v148_v6 = vlaneseq }
  0x5e   :  { %1385 = vmatprep.subr.bf16.mxu1 %v1628_v27  ;;  %v1571_v32 = vld [vmem:[%s2197_s1 + $0x280] ss:$8 sps:$4 sm:$0xff]   ;;  %v1579_v33 = vld [vmem:[%s2197_s1 + $0x294] ss:$8 sps:$4 sm:$0xff]   ;;  %v1577_v36 = vld [vmem:[%s2197_s1 + $0x290] ss:$8 sps:$4 sm:$0xff]  }
  0x5f   :  { %749 = vmatpush1.bf16.msra.mxu0 %v1565_v28  ;;  %v1631_v34 = vld [vmem:[%s2199_s3 + $0x10] sm:$0xff]   ;;  %v1632_v35 = vld [vmem:[%s2199_s3 + $0x58] sm:$0xff]   ;;  %v1585_v37 = vld [vmem:[%s2197_s1 + $0x2a4] ss:$8 sps:$4 sm:$0xff]   ;;  %v1687_v1 = vmov 0.0   ;;  %v149_v7 = vshrl.u32 %v148_v6, 7 }
  0x60   :  { %750 = vmatprep.subr.bf16.mxu0 %v1573_v29  ;;  %v1633_v38 = vld [vmem:[%s2199_s3 + $0x18] sm:$0xff]   ;;  %v1634_v39 = vld [vmem:[%s2199_s3 + $0x60] sm:$0xff]   ;;  %v40_v57 = vld [vmem:[%s2196_s0 + $0x30] sm:$0xff]  ;;  %vm1688_vm1 = vmmov 0   ;;  %vm1221_vm2 = vcmask 80896  }
  0x61   :  { %1386 = vmatpush3.bf16.msra.mxu1 %v1629_v30  ;;  %v1583_v40 = vld [vmem:[%s2197_s1 + $0x2a0] ss:$8 sps:$4 sm:$0xff]   ;;  %v1591_v41 = vld [vmem:[%s2197_s1 + $0x2b4] ss:$8 sps:$4 sm:$0xff]   ;;  %v1589_v43 = vld [vmem:[%s2197_s1 + $0x2b0] ss:$8 sps:$4 sm:$0xff]   ;;  %v47_v58 = vpack.c.bf16 %v40_v57, %v40_v57 }
  0x62   :  { %1387 = vmatprep.subr.bf16.mxu1 %v1630_v31  ;;  %v1635_v42 = vld [vmem:[%s2199_s3 + $0x20] sm:$0xff]   ;;  %v1603_v46 = vld [vmem:[%s2197_s1 + $0x2d4] ss:$8 sps:$4 sm:$0xff]   ;;  %v1601_v47 = vld [vmem:[%s2197_s1 + $0x2d0] ss:$8 sps:$4 sm:$0xff]   ;;  %v150_v8 = vsub.s32 0, %v149_v7 }
  0x63   :  { %751 = vmatpush1.bf16.msra.mxu0 %v1571_v32  ;;  %v1597_v44 = vld [vmem:[%s2197_s1 + $0x2c4] ss:$8 sps:$4 sm:$0xff]   ;;  %v1595_v45 = vld [vmem:[%s2197_s1 + $0x2c0] ss:$8 sps:$4 sm:$0xff]   ;;  %v1615_v50 = vld [vmem:[%s2197_s1 + $0x2f4] ss:$8 sps:$4 sm:$0xff]  }
  0x64   :  { %752 = vmatprep.subr.bf16.mxu0 %v1579_v33  ;;  %v1609_v48 = vld [vmem:[%s2197_s1 + $0x2e4] ss:$8 sps:$4 sm:$0xff]   ;;  %v1607_v49 = vld [vmem:[%s2197_s1 + $0x2e0] ss:$8 sps:$4 sm:$0xff]   ;;  %v1613_v51 = vld [vmem:[%s2197_s1 + $0x2f0] ss:$8 sps:$4 sm:$0xff]  }
  0x65   :  { %1388 = vmatpush3.bf16.msra.mxu1 %v1631_v34  ;;  %v38_v52 = vld [vmem:[%s2196_s0 + $0x20] sm:$0xff]  ;;  %v1636_v59 = vld [vmem:[%s2199_s3 + $0x68] sm:$0xff]   ;;  %v1638_v61 = vld [vmem:[%s2199_s3 + $0x70] sm:$0xff]   ;;  %v154_v10 = vsub.s32 1, %v149_v7 }
  0x66   :  { %1389 = vmatprep.subr.bf16.mxu1 %v1632_v35  ;;  %v1621_v53 = vld [vmem:[%s2197_s1 + $0x304] ss:$8 sps:$4 sm:$0xff]   ;;  %v45_v54 = vpack.c.bf16 %v38_v52, %v38_v52  ;;  %v1619_v55 = vld [vmem:[%s2197_s1 + $0x300] ss:$8 sps:$4 sm:$0xff]   ;;  %v1639_v62 = vld [vmem:[%s2199_s3 + $0x30] sm:$0xff]  }
  0x67   :  { %753 = vmatpush1.bf16.msra.mxu0 %v1577_v36  ;;  %v1637_v60 = vld [vmem:[%s2199_s3 + $0x28] sm:$0xff]   ;;  %v1640_v63 = vld [vmem:[%s2199_s3 + $0x78] sm:$0xff]   ;;  %v146_v9 = vld [vmem:[%s2198_s2] sm:$0x3] }
  0x68   :  { %754 = vmatprep.subr.bf16.mxu0 %v1585_v37  ;;  %v1641_v0 = vld [vmem:[%s2199_s3 + $0x38] sm:$0xff]   ;;  %v151_v11 = vrot.slane %v146_v9, %v150_v8  ;;  %v155_v12 = vrot.slane %v146_v9, %v154_v10  ;;  %v1642_v24 = vld [vmem:[%s2201_s5] sm:$0xff]   ;;  %v1643_v26 = vld [vmem:[%s2201_s5 + $0x8] sm:$0xff]  }
  0x69   :  { %1390 = vmatpush3.bf16.msra.mxu1 %v1633_v38  ;;  %v1644_v27 = vld [vmem:[%s2201_s5 + $0x10] sm:$0xff]   ;;  %v1645_v28 = vld [vmem:[%s2201_s5 + $0x18] sm:$0xff]   ;;  %v1646_v29 = vld [vmem:[%s2201_s5 + $0x20] sm:$0xff]  }
  0x6a   :  { %1391 = vmatprep.subr.bf16.mxu1 %v1634_v39  ;;  %v1647_v30 = vld [vmem:[%s2201_s5 + $0x28] sm:$0xff]   ;;  %v1648_v31 = vld [vmem:[%s2201_s5 + $0x30] sm:$0xff]   ;;  %v1649_v32 = vld [vmem:[%s2201_s5 + $0x38] sm:$0xff]  }
  0x6b   :  { %755 = vmatpush1.bf16.msra.mxu0 %v1583_v40  ;;  %v1348_v34 = vld [vmem:[%s2200_s4] ss:$0 sm:$0xff] }
  0x6c   :  { %756 = vmatprep.subr.bf16.mxu0 %v1591_v41  ;;  %v1650_v41 = vld [vmem:[%s2203_s7] sm:$0xff]  }
  0x6d   :  { %1392 = vmatpush3.bf16.msra.mxu1 %v1635_v42 }
  0x6e   :  { %1393 = vmatprep.subr.bf16.mxu1 %v1636_v59 }
  0x6f   :  { %757 = vmatpush1.bf16.msra.mxu0 %v1589_v43  ;;  %v1651_v43 = vld [vmem:[%s2203_s7 + $0x8] sm:$0xff]  }
  0x70   :  { %758 = vmatprep.subr.bf16.mxu0 %v1597_v44  ;;  %v1652_v44 = vld [vmem:[%s2203_s7 + $0x10] sm:$0xff]  }
  0x71   :  { %1394 = vmatpush3.bf16.msra.mxu1 %v1637_v60 }
  0x72   :  { %1395 = vmatprep.subr.bf16.mxu1 %v1638_v61 }
  0x73   :  { %759 = vmatpush1.bf16.msra.mxu0 %v1595_v45  ;;  %v1653_v45 = vld [vmem:[%s2203_s7 + $0x18] sm:$0xff]  }
  0x74   :  { %760 = vmatprep.subr.bf16.mxu0 %v1603_v46  ;;  %v1654_v46 = vld [vmem:[%s2203_s7 + $0x20] sm:$0xff]  }
  0x75   :  { %1396 = vmatpush3.bf16.msra.mxu1 %v1639_v62 }
  0x76   :  { %1397 = vmatprep.subr.bf16.mxu1 %v1640_v63 }
  0x77   :  { %761 = vmatpush1.bf16.msra.mxu0 %v1601_v47  ;;  %v1655_v47 = vld [vmem:[%s2203_s7 + $0x28] sm:$0xff]  }
  0x78   :  { %762 = vmatprep.subr.bf16.mxu0 %v1609_v48  ;;  %v1656_v48 = vld [vmem:[%s2203_s7 + $0x30] sm:$0xff]  }
  0x79   :  { %1398 = vmatpush3.bf16.msra.mxu1 %v1641_v0 }
  0x7a   :  { %1423 = vmatprep.subr.bf16.mxu1 %v1687_v1 }
  0x7b   :  { %763 = vmatpush1.bf16.msra.mxu0 %v1607_v49  ;;  %v1657_v49 = vld [vmem:[%s2203_s7 + $0x38] sm:$0xff]  }
  0x7c   :  { %764 = vmatprep.subr.bf16.mxu0 %v1615_v50  ;;  %v1365_v50 = vld [vmem:[%s2202_s6] ss:$0 sm:$0xff]  ;;  %s1689_s6 = smov [#allocation2]  }
  0x7d   :  { %s1241_s7 = sshll.u32 %s1689_s6, 4  ;;  %s1242_s7 = int_to_ptr.vmem [resolvable:$true] %s1241_s7 }
  0x7e   :  { %p1667_p1 = scmp.lt.s32.totalorder %s1242_s7, %s1242_s7 }
  0x7f   :  { %765 = vmatpush1.bf16.msra.mxu0 %v1613_v51 }
  0x80   :  { %775 = vmatprep.subr.bf16.mxu0 %v1621_v53 }
  0x82   :  { %767 = vmatmul.mubr.bf16.vlgmr.msra.gmra.mrb[0].mxu0 %v45_v54 }
  0x83   :  { %776 = vmatpush1.bf16.msra.mxu0 %v1619_v55  ;;  %807 = vmatprep.mubr.bf16.mxu0 %v1686_v56 }
  0x8e   :  { %1347 = vmatmul.mubr.msk.bf16.vlgmr.msra.gmra.mrb[0].mxu0 %vm648_vm0, %v47_v58  ;;  %v1374_v58 = vld [vmem:[%s2204_s8] ss:$0 sm:$0xff]  ;;  %s1662_s8 = scalar_lea.vmem %s1242_s7, 128 }
  0x8f   :  { %p1663_p0 = scmp.ne.s32.totalorder %s1242_s7, %s1662_s8  ;;  %p1668_p2 = scmp.lt.s32.totalorder %s1662_s8, %s1662_s8 }
  0x91   :  { %p1669_p3 = por %p1668_p2, %p1667_p1 }
  0x93   :  { %p1670_p4 = pnand %p1669_p3, %p1663_p0 }
 0x11b   :  { %v686_v2 = vpop.f32.mrb[0].mxu1 }
 0x11c   :  { %v688_v3 = vpop.f32.mrb[1].mxu1  ;;  %v687_v13 = vadd.f32 %v686_v2, %v151_v11 }
 0x11d   :  { %v690_v4 = vpop.f32.mrb[2].mxu1  ;;  %v689_v14 = vadd.f32 %v688_v3, %v155_v12 }
 0x11e   :  { %v691_v5 = vpop.f32.mrb[3].mxu1 }
 0x161   :  { %v809_v15 = vpop.f32.mrb[0].mxu0 }
 0x162   :  { %v1464_v16 = vadd.f32 %v809_v15, %v687_v13  ;;  %v811_v17 = vpop.f32.mrb[1].mxu0 }
 0x163   :  { %v1466_v18 = vadd.f32 %v811_v17, %v689_v14  ;;  %v813_v19 = vpop.f32.mrb[2].mxu0 }
 0x164   :  { %v816_v20 = vmax.f32 %v1464_v16, 0.0  ;;  %v814_v21 = vpop.f32.mrb[3].mxu0 }
 0x165   :  { %v817_v22 = vmax.f32 %v1466_v18, 0.0 }
 0x166   :  { %v818_v25 = vpack.c.bf16 %v816_v20, %v816_v20 }
 0x167   :  { %v819_v23 = vpack.c.bf16 %v817_v22, %v817_v22 }
 0x169   :  { %987 = vmatprep.mubr.bf16.mxu1 %v819_v23 }
 0x16a   :  { %988 = vmatmul.mubr.bf16.vlgmr.msra.gmra.mrb[4].mxu1 %v818_v25 }
 0x16b   :  { %1424 = vmatpush3.bf16.msra.mxu1 %v1642_v24  ;;  %1439 = vmatprep.mubr.msk.bf16.mxu1 %vm1688_vm1, %v1687_v1 }
 0x16c   :  { %1425 = vmatprep.subr.bf16.mxu1 %v1687_v1 }
 0x16f   :  { %1426 = vmatpush3.bf16.msra.mxu1 %v1643_v26 }
 0x170   :  { %1427 = vmatprep.subr.bf16.mxu1 %v1687_v1 }
 0x173   :  { %1428 = vmatpush3.bf16.msra.mxu1 %v1644_v27 }
 0x174   :  { %1429 = vmatprep.subr.bf16.mxu1 %v1687_v1 }
 0x177   :  { %1430 = vmatpush3.bf16.msra.mxu1 %v1645_v28 }
 0x178   :  { %1431 = vmatprep.subr.bf16.mxu1 %v1687_v1 }
 0x17b   :  { %1432 = vmatpush3.bf16.msra.mxu1 %v1646_v29 }
 0x17c   :  { %1433 = vmatprep.subr.bf16.mxu1 %v1687_v1 }
 0x17f   :  { %1434 = vmatpush3.bf16.msra.mxu1 %v1647_v30 }
 0x180   :  { %1435 = vmatprep.subr.bf16.mxu1 %v1687_v1 }
 0x183   :  { %1436 = vmatpush3.bf16.msra.mxu1 %v1648_v31 }
 0x184   :  { %1437 = vmatprep.subr.bf16.mxu1 %v1687_v1 }
 0x187   :  { %1438 = vmatpush3.bf16.msra.mxu1 %v1649_v32 }
 0x188   :  { %1443 = vmatprep.subr.bf16.mxu1 %v1687_v1 }
 0x23d   :  { %v1399_v33 = vpop.f32.mrb[4].mxu1 }
 0x23e   :  { %v1400_v35 = vpop.f32.mrb[5].mxu1 }
 0x23f   :  { %v1401_v36 = vadd.f32 %v1400_v35, %v1399_v33  ;;  %v1402_v37 = vpop.f32.mrb[6].mxu1 }
 0x240   :  { %v1403_v38 = vpop.f32.mrb[7].mxu1 }
 0x241   :  { %v990_v39 = vadd.f32 %v1401_v36, %v1348_v34 }
 0x243   :  { %v995_v40 = vmax.f32 %v990_v39, 0.0 }
 0x245   :  { %v996_v42 = vpack.c.bf16 %v995_v40, %v995_v40 }
 0x247   :  { %1440 = vmatmul.mubr.bf16.vlgmr.msra.gmra.mrb[8].mxu1 %v996_v42 }
 0x248   :  { %1444 = vmatpush3.bf16.msra.mxu1 %v1650_v41  ;;  %1459 = vmatprep.mubr.msk.bf16.mxu1 %vm1688_vm1, %v1687_v1 }
 0x249   :  { %1445 = vmatprep.subr.bf16.mxu1 %v1687_v1 }
 0x24c   :  { %1446 = vmatpush3.bf16.msra.mxu1 %v1651_v43 }
 0x24d   :  { %1447 = vmatprep.subr.bf16.mxu1 %v1687_v1 }
 0x250   :  { %1448 = vmatpush3.bf16.msra.mxu1 %v1652_v44 }
 0x251   :  { %1449 = vmatprep.subr.bf16.mxu1 %v1687_v1 }
 0x254   :  { %1450 = vmatpush3.bf16.msra.mxu1 %v1653_v45 }
 0x255   :  { %1451 = vmatprep.subr.bf16.mxu1 %v1687_v1 }
 0x258   :  { %1452 = vmatpush3.bf16.msra.mxu1 %v1654_v46 }
 0x259   :  { %1453 = vmatprep.subr.bf16.mxu1 %v1687_v1 }
 0x25c   :  { %1454 = vmatpush3.bf16.msra.mxu1 %v1655_v47 }
 0x25d   :  { %1455 = vmatprep.subr.bf16.mxu1 %v1687_v1 }
 0x260   :  { %1456 = vmatpush3.bf16.msra.mxu1 %v1656_v48 }
 0x261   :  { %1457 = vmatprep.subr.bf16.mxu1 %v1687_v1 }
 0x264   :  { %1458 = vmatpush3.bf16.msra.mxu1 %v1657_v49 }
 0x31a   :  { %v1102_v51 = vpop.f32.mrb[8].mxu1 }
 0x31b   :  { %v1103_v52 = vadd.f32 %v1365_v50, %v1102_v51  ;;  %v1441_v53 = vpop.f32.mrb[9].mxu1 }
 0x31c   :  { %v1105_v54 = vpop.f32.mrb[10].mxu1 }
 0x31d   :  { %v1108_v55 = vmax.f32 %v1103_v52, 0.0  ;;  %v1442_v56 = vpop.f32.mrb[11].mxu1 }
 0x31f   :  { %v1109_v57 = vpack.c.bf16 %v1108_v55, %v1108_v55 }
 0x321   :  { %1460 = vmatmul.mubr.bf16.vlgmr.msra.gmra.mrb[12].mxu1 %v1109_v57 }
 0x3f4   :  { %v1215_v59 = vpop.f32.mrb[12].mxu1 }
 0x3f5   :  { %v1216_v60 = vadd.f32 %v1374_v58, %v1215_v59  ;;  %v1461_v61 = vpop.f32.mrb[13].mxu1 }
 0x3f6   :  { %v1218_v62 = vpop.f32.mrb[14].mxu1 }
 0x3f7   :  { %v1462_v63 = vpop.f32.mrb[15].mxu1  ;;  %v1222_v0 = vsel %vm1221_vm2, %v1216_v60, -inf }
 0x3f8   :  { %1223 = vmax.xlane.f32.xlu0 %v1222_v0 }
 0x485   :  { %v1224_v1 = vpop.xlane.xlu0 %1223 }
 0x486   :  { %v1225_v2 = vsub.f32 %v1216_v60, %v1224_v1 }
 0x488   :  { %v1226_v3 = vmul.f32 1.442695, %v1225_v2 }
 0x48a   :  { %1658 = vpow2.f32 %v1226_v3 }
 0x494   :  { %v1659_v4 = vpop.eup %1658 }
 0x495   :  { %v1228_v5 = vsel %vm1221_vm2, %v1659_v4, 0.0 }
 0x496   :  { %1229 = vadd.xlane.f32.xlu0 %v1228_v5 }
 0x523   :  { %v1230_v6 = vpop.xlane.xlu0 %1229 }
 0x524   :  { %1660 = vlog2.f32 %v1230_v6 }
 0x52e   :  { %v1661_v7 = vpop.eup %1660 }
 0x52f   :  { %v1232_v8 = vmul.f32 0.6931472, %v1661_v7 }
 0x531   :  { %v1233_v9 = vsub.f32 %v1225_v2, %v1232_v8 }
 0x533   :  { %1234 = vst.msk [vmem:[#allocation2] sm:$0xff] %vm1221_vm2, %v1233_v9 }
 0x534   :  { %1673 = shalt.err (!%p1670_p4)
}
 0x535   :  { %s1674_s10 = scalar_lea.hbm %s2205_s9, 128 }
 0x536   :  { %p1675_p5 = scmp.ne.s32.totalorder %s2205_s9, %s1674_s10  ;;  %p1678_p6 = scmp.lt.u32.totalorder %s1674_s10, %s2205_s9 }
 0x538   :  { %p1680_p7 = pnand %p1678_p6, %p1675_p5 }
 0x53a   :  { %1683 = shalt.err (!%p1680_p7)
}
 0x53b   :  { %1244 = dma.vmem_to_hbm [thread:$0]  %s1242_s7, 128, %s2205_s9, [#allocation3]  }
 0x53c   :  { %1684 = dma.done.wait [#allocation3], 128  }
 0x53d   :  { %1685 = vsyncadd [#allocation3], 4294967168 }
 0x53e   :  { %1248 = vsyncpa [#allocation3], 1 }

</bundles_post_ra>
